<compile_context>
chip_gen: v7x
topology: tpu7x:2x2x1
jax: 0.10.0
libtpu: 0.0.40
codegen_flags: <defaults>
</compile_context>

<pallas_src>
import jax
import jax.numpy as jnp
from jax.experimental import pallas as pl
from jax.experimental.pallas import tpu as pltpu

LEAKY_SLOPE = 0.1


def _leaky_relu(x, slope=LEAKY_SLOPE):
    return jnp.where(x > 0, x, slope * x)


def _round_up(n, m):
    return ((n + m - 1) // m) * m


# --------------------------------------------------------------------------- #
# Kernel
# --------------------------------------------------------------------------- #
def qnet_kernel(x_ref, w1_ref, b1_ref, w2_ref, b2_ref, w4_ref, b4_ref, o_ref):
    """x_ref: [tb, obs] f32 (un-padded lanes); weights/biases resident in VMEM
    with hidden padded to 128 lanes (padding is exactly zero through bias-add
    and leaky_relu); o_ref: [tb, action_dim] f32 (narrow, lane-masked store)."""
    # fc1 + LeakyReLU
    h = jnp.dot(x_ref[...], w1_ref[...],
                preferred_element_type=jnp.float32) + b1_ref[...]
    h = _leaky_relu(h)
    # fc2 + LeakyReLU
    h = jnp.dot(h, w2_ref[...],
                preferred_element_type=jnp.float32) + b2_ref[...]
    h = _leaky_relu(h)
    # fc4 (PyTorch forward returns fc4(z2); fc3/z3 is dead and skipped)
    o_ref[...] = jnp.dot(h, w4_ref[...],
                         preferred_element_type=jnp.float32) + b4_ref[...]


# --------------------------------------------------------------------------- #
# One-time parameter packing (hoisted out of the forward per review)
# --------------------------------------------------------------------------- #
def pack_params(params, lane=128):
    """Pad the hidden dim to a lane multiple once; f32 throughout.
    Dead fc3 (w3/b3) is intentionally excluded — it does not affect the output."""
    f32 = jnp.float32
    obs_dim, hidden = params["w1"].shape
    action_dim = params["w4"].shape[1]
    H = _round_up(hidden, lane)

    w1 = jnp.zeros((obs_dim, H), f32).at[:, :hidden].set(params["w1"].astype(f32))
    b1 = jnp.zeros((1, H), f32).at[0, :hidden].set(params["b1"].reshape(-1).astype(f32))
    w2 = jnp.zeros((H, H), f32).at[:hidden, :hidden].set(params["w2"].astype(f32))
    b2 = jnp.zeros((1, H), f32).at[0, :hidden].set(params["b2"].reshape(-1).astype(f32))
    w4 = jnp.zeros((H, action_dim), f32).at[:hidden, :].set(params["w4"].astype(f32))
    b4 = params["b4"].reshape(1, action_dim).astype(f32)

    return dict(w1=w1, b1=b1, w2=w2, b2=b2, w4=w4, b4=b4,
                obs_dim=obs_dim, hidden=hidden, action_dim=action_dim, H=H)


# --------------------------------------------------------------------------- #
# Forward
# --------------------------------------------------------------------------- #
def q_approximation_forward(x, packed, *, tile_b=1024):
    """x: [B, obs_dim]. packed: output of pack_params()."""
    B, obs_dim = x.shape
    assert obs_dim == packed["obs_dim"]
    H = packed["H"]
    action_dim = packed["action_dim"]

    # >= 2 grid steps once B > 8 so the 'parallel' batch axis can shard across
    # v7x's two TensorCores; multiple of 8 sublanes; capped at tile_b rows.
    tb = min(tile_b, _round_up(max(pl.cdiv(B, 2), 8), 8))
    Bp = _round_up(B, tb)

    x = x.astype(jnp.float32)
    if Bp != B:
        x = jnp.pad(x, ((0, Bp - B), (0, 0)))   # only (Bp-B)*obs_dim extra rows

    grid = (Bp // tb,)

    out = pl.pallas_call(
        qnet_kernel,
        out_shape=jax.ShapeDtypeStruct((Bp, action_dim), jnp.float32),
        grid_spec=pltpu.PrefetchScalarGridSpec(
            num_scalar_prefetch=0,
            grid=grid,
            in_specs=[
                pl.BlockSpec((tb, obs_dim), lambda i: (i, 0)),    # x: batch-tiled, un-padded lanes
                pl.BlockSpec((obs_dim, H), lambda i: (0, 0)),     # w1: resident
                pl.BlockSpec((1, H), lambda i: (0, 0)),           # b1: resident
                pl.BlockSpec((H, H), lambda i: (0, 0)),           # w2: resident
                pl.BlockSpec((1, H), lambda i: (0, 0)),           # b2: resident
                pl.BlockSpec((H, action_dim), lambda i: (0, 0)),  # w4: resident
                pl.BlockSpec((1, action_dim), lambda i: (0, 0)),  # b4: resident
            ],
            out_specs=pl.BlockSpec((tb, action_dim), lambda i: (i, 0)),
        ),
        compiler_params=pltpu.CompilerParams(
            dimension_semantics=("parallel",)),
    )(x, packed["w1"], packed["b1"], packed["w2"], packed["b2"],
      packed["w4"], packed["b4"])

    return out[:B]


# --------------------------------------------------------------------------- #
# Synthetic params + pure-JAX reference
# --------------------------------------------------------------------------- #
def init_params(key, obs_dim, action_dim, hidden=20):
    """Deterministic synthetic params. Weights stored as [in, out], bias [1, out]."""
    dims = [(obs_dim, hidden), (hidden, hidden), (hidden, hidden), (hidden, action_dim)]
    params = {}
    for i, (din, dout) in enumerate(dims, start=1):
        key, kw, kb = jax.random.split(key, 3)
        bound = 1.0 / jnp.sqrt(din)  # mimic PyTorch Linear init scale
        params[f"w{i}"] = jax.random.uniform(kw, (din, dout), jnp.float32, -bound, bound)
        params[f"b{i}"] = jax.random.uniform(kb, (1, dout), jnp.float32, -bound, bound)
    return params


def reference_forward(x, p):
    z1 = _leaky_relu(x @ p["w1"] + p["b1"])
    z2 = _leaky_relu(z1 @ p["w2"] + p["b2"])
    # z3 = leaky_relu(z2 @ w3 + b3) is computed but unused in the PyTorch module.
    return z2 @ p["w4"] + p["b4"]


if __name__ == "__main__":
    obs_dim, action_dim, batch = 8, 4, 2

    key = jax.random.PRNGKey(0)
    key, kx = jax.random.split(key)
    x = jax.random.normal(kx, (batch, obs_dim), jnp.float32)
    params = init_params(key, obs_dim, action_dim)

    packed = pack_params(params)  # one-time packing, reused across forwards

    out = jax.block_until_ready(q_approximation_forward(x, packed))
    ref = reference_forward(x, params)
    assert out.shape == (batch, action_dim)
    assert jnp.allclose(out, ref, atol=1e-3, rtol=1e-3), "mismatch vs JAX reference"

    # Second check: batch that needs padding + a 2-step grid (both TCs on v7x).
    key, kx2 = jax.random.split(key)
    x2 = jax.random.normal(kx2, (300, obs_dim), jnp.float32)
    out2 = jax.block_until_ready(q_approximation_forward(x2, packed))
    ref2 = reference_forward(x2, params)
    assert out2.shape == (300, action_dim)
    assert jnp.allclose(out2, ref2, atol=1e-3, rtol=1e-3), "mismatch vs JAX reference (B=300)"

    print("KERNEL_OK")
</pallas_src>

<mosaic_0001>
module attributes {stable_mosaic.version = 11 : i64} {
  func.func @qnet_kernel(%arg0: i32, %arg1: memref<8x8xf32, #tpu.memory_space<vmem>>, %arg2: memref<8x128xf32, #tpu.memory_space<vmem>>, %arg3: memref<1x128xf32, #tpu.memory_space<vmem>>, %arg4: memref<128x128xf32, #tpu.memory_space<vmem>>, %arg5: memref<1x128xf32, #tpu.memory_space<vmem>>, %arg6: memref<128x4xf32, #tpu.memory_space<vmem>>, %arg7: memref<1x4xf32, #tpu.memory_space<vmem>>, %arg8: memref<8x4xf32, #tpu.memory_space<vmem>>) attributes {dimension_semantics = [#tpu.dimension_semantics<parallel>], iteration_bounds = array<i64: 1>, scalar_prefetch = 0 : i64, scratch_operands = 0 : i64, tpu.core_type = #tpu.core_type<tc>, window_params = [{transform_indices = @transform_0, window_bounds = array<i64: 8, 8>}, {pipeline_mode = #tpu.pipeline_mode<synchronous>, transform_indices = @transform_1, window_bounds = array<i64: 8, 128>}, {pipeline_mode = #tpu.pipeline_mode<synchronous>, transform_indices = @transform_2, window_bounds = array<i64: 1, 128>}, {pipeline_mode = #tpu.pipeline_mode<synchronous>, transform_indices = @transform_3, window_bounds = array<i64: 128, 128>}, {pipeline_mode = #tpu.pipeline_mode<synchronous>, transform_indices = @transform_4, window_bounds = array<i64: 1, 128>}, {pipeline_mode = #tpu.pipeline_mode<synchronous>, transform_indices = @transform_5, window_bounds = array<i64: 128, 4>}, {pipeline_mode = #tpu.pipeline_mode<synchronous>, transform_indices = @transform_6, window_bounds = array<i64: 1, 4>}, {transform_indices = @transform_7, window_bounds = array<i64: 8, 4>}]} {
    %c0 = arith.constant 0 : index
    %c0_0 = arith.constant 0 : index
    %0 = vector.load %arg1[%c0, %c0_0] : memref<8x8xf32, #tpu.memory_space<vmem>>, vector<8x8xf32>
    %c0_1 = arith.constant 0 : index
    %c0_2 = arith.constant 0 : index
    %1 = vector.load %arg2[%c0_1, %c0_2] : memref<8x128xf32, #tpu.memory_space<vmem>>, vector<8x128xf32>
    %cst = arith.constant dense<0.000000e+00> : vector<8x128xf32>
    %2 = tpu.matmul %0, %1, %cst {dimension_numbers = #tpu.dot_dimension_numbers<[1], [0], [0], [1], [0, 0, 1, 1], [], []>} : vector<8x8xf32>, vector<8x128xf32>, vector<8x128xf32> -> vector<8x128xf32>
    %c0_3 = arith.constant 0 : index
    %c0_4 = arith.constant 0 : index
    %3 = vector.load %arg3[%c0_3, %c0_4] : memref<1x128xf32, #tpu.memory_space<vmem>>, vector<1x128xf32>
    %4 = vector.broadcast %3 : vector<1x128xf32> to vector<8x128xf32>
    %5 = arith.addf %2, %4 : vector<8x128xf32>
    %cst_5 = arith.constant 0.000000e+00 : f32
    %6 = vector.broadcast %cst_5 : f32 to vector<8x128xf32>
    %7 = arith.cmpf ogt, %5, %6 : vector<8x128xf32>
    %cst_6 = arith.constant 1.000000e-01 : f32
    %8 = vector.broadcast %cst_6 : f32 to vector<8x128xf32>
    %9 = arith.mulf %8, %5 : vector<8x128xf32>
    %10 = arith.select %7, %5, %9 : vector<8x128xi1>, vector<8x128xf32>
    %c0_7 = arith.constant 0 : index
    %c0_8 = arith.constant 0 : index
    %11 = vector.load %arg4[%c0_7, %c0_8] : memref<128x128xf32, #tpu.memory_space<vmem>>, vector<128x128xf32>
    %cst_9 = arith.constant dense<0.000000e+00> : vector<8x128xf32>
    %12 = tpu.matmul %10, %11, %cst_9 {dimension_numbers = #tpu.dot_dimension_numbers<[1], [0], [0], [1], [0, 0, 1, 1], [], []>} : vector<8x128xf32>, vector<128x128xf32>, vector<8x128xf32> -> vector<8x128xf32>
    %c0_10 = arith.constant 0 : index
    %c0_11 = arith.constant 0 : index
    %13 = vector.load %arg5[%c0_10, %c0_11] : memref<1x128xf32, #tpu.memory_space<vmem>>, vector<1x128xf32>
    %14 = vector.broadcast %13 : vector<1x128xf32> to vector<8x128xf32>
    %15 = arith.addf %12, %14 : vector<8x128xf32>
    %cst_12 = arith.constant 0.000000e+00 : f32
    %16 = vector.broadcast %cst_12 : f32 to vector<8x128xf32>
    %17 = arith.cmpf ogt, %15, %16 : vector<8x128xf32>
    %cst_13 = arith.constant 1.000000e-01 : f32
    %18 = vector.broadcast %cst_13 : f32 to vector<8x128xf32>
    %19 = arith.mulf %18, %15 : vector<8x128xf32>
    %20 = arith.select %17, %15, %19 : vector<8x128xi1>, vector<8x128xf32>
    %c0_14 = arith.constant 0 : index
    %c0_15 = arith.constant 0 : index
    %21 = vector.load %arg6[%c0_14, %c0_15] : memref<128x4xf32, #tpu.memory_space<vmem>>, vector<128x4xf32>
    %cst_16 = arith.constant dense<0.000000e+00> : vector<8x4xf32>
    %22 = tpu.matmul %20, %21, %cst_16 {dimension_numbers = #tpu.dot_dimension_numbers<[1], [0], [0], [1], [0, 0, 1, 1], [], []>} : vector<8x128xf32>, vector<128x4xf32>, vector<8x4xf32> -> vector<8x4xf32>
    %c0_17 = arith.constant 0 : index
    %c0_18 = arith.constant 0 : index
    %23 = vector.load %arg7[%c0_17, %c0_18] : memref<1x4xf32, #tpu.memory_space<vmem>>, vector<1x4xf32>
    %24 = vector.broadcast %23 : vector<1x4xf32> to vector<8x4xf32>
    %25 = arith.addf %22, %24 : vector<8x4xf32>
    %c0_19 = arith.constant 0 : index
    %c0_20 = arith.constant 0 : index
    %26 = vector.load %arg8[%c0_19, %c0_20] : memref<8x4xf32, #tpu.memory_space<vmem>>, vector<8x4xf32>
    tpu.vector_store %arg8[%c0_19, %c0_20], %25 {strides = array<i32>} : memref<8x4xf32, #tpu.memory_space<vmem>>, vector<8x4xf32>,
    return
  }
  func.func @transform_0(%arg0: i32) -> (i32, i32) {
    %c0_i32 = arith.constant 0 : i32
    %c0_i32_0 = arith.constant 0 : i32
    return %arg0, %c0_i32 : i32, i32
  }
  func.func @transform_1(%arg0: i32) -> (i32, i32) {
    %c0_i32 = arith.constant 0 : i32
    %c0_i32_0 = arith.constant 0 : i32
    %c0_i32_1 = arith.constant 0 : i32
    return %c0_i32, %c0_i32_0 : i32, i32
  }
  func.func @transform_2(%arg0: i32) -> (i32, i32) {
    %c0_i32 = arith.constant 0 : i32
    %c0_i32_0 = arith.constant 0 : i32
    %c0_i32_1 = arith.constant 0 : i32
    return %c0_i32, %c0_i32_0 : i32, i32
  }
  func.func @transform_3(%arg0: i32) -> (i32, i32) {
    %c0_i32 = arith.constant 0 : i32
    %c0_i32_0 = arith.constant 0 : i32
    %c0_i32_1 = arith.constant 0 : i32
    return %c0_i32, %c0_i32_0 : i32, i32
  }
  func.func @transform_4(%arg0: i32) -> (i32, i32) {
    %c0_i32 = arith.constant 0 : i32
    %c0_i32_0 = arith.constant 0 : i32
    %c0_i32_1 = arith.constant 0 : i32
    return %c0_i32, %c0_i32_0 : i32, i32
  }
  func.func @transform_5(%arg0: i32) -> (i32, i32) {
    %c0_i32 = arith.constant 0 : i32
    %c0_i32_0 = arith.constant 0 : i32
    %c0_i32_1 = arith.constant 0 : i32
    return %c0_i32, %c0_i32_0 : i32, i32
  }
  func.func @transform_6(%arg0: i32) -> (i32, i32) {
    %c0_i32 = arith.constant 0 : i32
    %c0_i32_0 = arith.constant 0 : i32
    %c0_i32_1 = arith.constant 0 : i32
    return %c0_i32, %c0_i32_0 : i32, i32
  }
  func.func @transform_7(%arg0: i32) -> (i32, i32) {
    %c0_i32 = arith.constant 0 : i32
    %c0_i32_0 = arith.constant 0 : i32
    return %arg0, %c0_i32 : i32, i32
  }
}

</mosaic_0001>

<bundles_post_ra>
// kernel: tpu_custom_call.1
= control target key start
LH: loop header
LB: loop body
LE: loop exit
PB: predicated region body
PF: predicated region fallthrough
CT: control target
= control target key end

     0   :  { %12 = vsyncpa [#allocation3], 0  ;;  %s511_s24 = smov [#allocation2]   ;;  %s697_s0 = inlined_call_operand.vmem [shape: f32[8,8], index: 0, kind: input, shape index: {}]   ;;  %s698_s1 = inlined_call_operand.hbm [shape: f32[8,128], index: 1, kind: input, shape index: {}]   ;;  %s699_s2 = inlined_call_operand.vmem [shape: f32[1,128], index: 2, kind: input, shape index: {}]   ;;  %s700_s3 = inlined_call_operand.vmem [shape: f32[128,128], index: 3, kind: input, shape index: {}]   ;;  %s701_s4 = inlined_call_operand.vmem [shape: f32[1,128], index: 4, kind: input, shape index: {}]   ;;  %s702_s5 = inlined_call_operand.vmem [shape: f32[128,4], index: 5, kind: input, shape index: {}]   ;;  %s703_s6 = inlined_call_operand.vmem [shape: f32[1,4], index: 6, kind: input, shape index: {}]   ;;  %s704_s7 = inlined_call_operand.vmem [shape: f32[8,4], index: 7, kind: output, shape index: {}]  }
   0x1   :  { %s21_s25 = sshll.u32 %s511_s24, 4  ;;  %s487_s28 = scalar_lea.hbm %s698_s1, 128  ;;  %s22_s25 = int_to_ptr.vmem [resolvable:$true] %s21_s25 }
   0x2   :  { %p488_p0 = scmp.ne.s32.totalorder %s698_s1, %s487_s28  ;;  %p491_p1 = scmp.lt.u32.totalorder %s487_s28, %s698_s1 }
   0x4   :  { %p493_p2 = pnand %p491_p1, %p488_p0 }
   0x6   :  { %496 = shalt.err (!%p493_p2)
}
   0x7   :  { %s497_s10 = scalar_lea.vmem %s22_s25, 128  ;;  %p502_p4 = scmp.lt.s32.totalorder %s22_s25, %s22_s25 }
   0x8   :  { %p498_p3 = scmp.ne.s32.totalorder %s22_s25, %s497_s10  ;;  %p503_p5 = scmp.lt.s32.totalorder %s497_s10, %s497_s10 }
   0xa   :  { %p504_p6 = por %p503_p5, %p502_p4 }
   0xc   :  { %p505_p7 = pnand %p504_p6, %p498_p3 }
   0xe   :  { %508 = shalt.err (!%p505_p7)
}
   0xf   :  { %24 = dma.hbm_to_vmem [thread:$0]  %s698_s1, 128, %s22_s25, [#allocation3]  }
  0x10   :  { %509 = dma.done.wait [#allocation3], 128  }
  0x11   :  { %510 = vsyncadd [#allocation3], 4294967168  ;;  %v512_v0 = vmov 0.0   ;;  %vm513_vm0 = vmmov 0   ;;  %v514_v1 = vmov 0.0|0.0   ;;  %vm47_vm1 = vcmask 64512  }
  0x12   :  { %360 = vmatprep.subr.mxu0 %v512_v0  ;;  %362 = vmatprep.mubr.msk.f32.mxu0 %vm513_vm0, %v512_v0  ;;  %v39_v2 = vld [vmem:[#allocation2] sm:$0xff]  ;;  %v125_v5 = vld [vmem:[%s700_s3 + $0x8] sm:$0xff]  ;;  %v126_v6 = vld [vmem:[%s700_s3 + $0x10] sm:$0xff]  ;;  %vm313_vm4 = vcmask 31744  }
  0x13   :  { %435 = vmatprep.subr.bf16.mxu1 %v514_v1  ;;  %397 = vmatprep.mubr.msk.f32.mxu1 %vm513_vm0, %v512_v0  ;;  %v38_v3 = vld [vmem:[%s697_s0] sm:$0xff]  ;;  %v127_v7 = vld [vmem:[%s700_s3 + $0x18] sm:$0xff]  ;;  %v129_v11 = vld [vmem:[%s700_s3 + $0x28] sm:$0xff] }
  0x14   :  { %v124_v4 = vld [vmem:[%s700_s3] sm:$0xff]  ;;  %361 = vmatpush3.msra.mxu0 %v39_v2  ;;  %v439_v9 = vpack.c.bf16 %v127_v7, %v126_v6  ;;  %v130_v13 = vld [vmem:[%s700_s3 + $0x30] sm:$0xff]  ;;  %v131_v14 = vld [vmem:[%s700_s3 + $0x38] sm:$0xff] }
  0x15   :  { %363 = vmatmul.mubr.msk.f32.vlgmr.msra.gmra.mrb[0].mxu0 %vm47_vm1, %v38_v3  ;;  %v436_v8 = vpack.c.bf16 %v125_v5, %v124_v4  ;;  %459 = vmatprep.subr.bf16.mxu0 %v514_v1  ;;  %v128_v10 = vld [vmem:[%s700_s3 + $0x20] sm:$0xff]  ;;  %v445_v15 = vpack.c.bf16 %v131_v14, %v130_v13  ;;  %v133_v17 = vld [vmem:[%s700_s3 + $0x48] sm:$0xff]  ;;  %v134_v19 = vld [vmem:[%s700_s3 + $0x50] sm:$0xff] }
  0x16   :  { %432 = vmatprep.mubr.msk.f32.mxu0 %vm513_vm0, %v512_v0  ;;  %v442_v12 = vpack.c.bf16 %v129_v11, %v128_v10  ;;  %v132_v16 = vld [vmem:[%s700_s3 + $0x40] sm:$0xff]  ;;  %v135_v20 = vld [vmem:[%s700_s3 + $0x58] sm:$0xff]  ;;  %v137_v23 = vld [vmem:[%s700_s3 + $0x68] sm:$0xff] }
  0x17   :  { %437 = vmatpush3.bf16.msra.mxu1 %v436_v8  ;;  %v448_v18 = vpack.c.bf16 %v133_v17, %v132_v16  ;;  %v451_v21 = vpack.c.bf16 %v135_v20, %v134_v19  ;;  %v136_v22 = vld [vmem:[%s700_s3 + $0x60] sm:$0xff]  ;;  %v138_v25 = vld [vmem:[%s700_s3 + $0x70] sm:$0xff]  ;;  %v139_v26 = vld [vmem:[%s700_s3 + $0x78] sm:$0xff] }
  0x18   :  { %438 = vmatprep.subr.bf16.mxu1 %v514_v1  ;;  %v454_v24 = vpack.c.bf16 %v137_v23, %v136_v22  ;;  %v457_v27 = vpack.c.bf16 %v139_v26, %v138_v25  ;;  %v220_v28 = vld [vmem:[%s702_s5] sm:$0xff]  ;;  %v221_v29 = vld [vmem:[%s702_s5 + $0x8] sm:$0xff]  ;;  %v222_v30 = vld [vmem:[%s702_s5 + $0x10] sm:$0xff] }
  0x19   :  { %v460_v31 = vpack.c.bf16 %v221_v29, %v220_v28  ;;  %v223_v32 = vld [vmem:[%s702_s5 + $0x18] sm:$0xff]  ;;  %v224_v34 = vld [vmem:[%s702_s5 + $0x20] sm:$0xff]  ;;  %v225_v35 = vld [vmem:[%s702_s5 + $0x28] sm:$0xff] }
  0x1a   :  { %v463_v33 = vpack.c.bf16 %v223_v32, %v222_v30  ;;  %v466_v36 = vpack.c.bf16 %v225_v35, %v224_v34  ;;  %v226_v37 = vld [vmem:[%s702_s5 + $0x30] sm:$0xff]  ;;  %v227_v38 = vld [vmem:[%s702_s5 + $0x38] sm:$0xff]  ;;  %v228_v40 = vld [vmem:[%s702_s5 + $0x40] sm:$0xff] }
  0x1b   :  { %440 = vmatpush3.bf16.msra.mxu1 %v439_v9  ;;  %461 = vmatpush3.bf16.msra.mxu0 %v460_v31  ;;  %v469_v39 = vpack.c.bf16 %v227_v38, %v226_v37  ;;  %v229_v41 = vld [vmem:[%s702_s5 + $0x48] sm:$0xff]  ;;  %v230_v43 = vld [vmem:[%s702_s5 + $0x50] sm:$0xff]  ;;  %v231_v44 = vld [vmem:[%s702_s5 + $0x58] sm:$0xff] }
  0x1c   :  { %441 = vmatprep.subr.bf16.mxu1 %v514_v1  ;;  %462 = vmatprep.subr.bf16.mxu0 %v514_v1  ;;  %v472_v42 = vpack.c.bf16 %v229_v41, %v228_v40  ;;  %v475_v45 = vpack.c.bf16 %v231_v44, %v230_v43  ;;  %v232_v46 = vld [vmem:[%s702_s5 + $0x60] sm:$0xff]  ;;  %v233_v47 = vld [vmem:[%s702_s5 + $0x68] sm:$0xff]  ;;  %v234_v55 = vld [vmem:[%s702_s5 + $0x70] sm:$0xff] }
  0x1d   :  { %v478_v48 = vpack.c.bf16 %v233_v47, %v232_v46  ;;  %v320_v49 = vld [vmem:[%s699_s2] ss:$0 sm:$0xff]  ;;  %v235_v56 = vld [vmem:[%s702_s5 + $0x78] sm:$0xff] }
  0x1e   :  { %v481_v57 = vpack.c.bf16 %v235_v56, %v234_v55  ;;  %v322_v58 = vld [vmem:[%s701_s4] ss:$0 sm:$0xff] }
  0x1f   :  { %443 = vmatpush3.bf16.msra.mxu1 %v442_v12  ;;  %464 = vmatpush3.bf16.msra.mxu0 %v463_v33  ;;  %v323_v0 = vld [vmem:[%s703_s6] ss:$0 sm:$0xff] }
  0x20   :  { %444 = vmatprep.subr.bf16.mxu1 %v514_v1  ;;  %465 = vmatprep.subr.bf16.mxu0 %v514_v1 }
  0x23   :  { %446 = vmatpush3.bf16.msra.mxu1 %v445_v15  ;;  %467 = vmatpush3.bf16.msra.mxu0 %v466_v36 }
  0x24   :  { %447 = vmatprep.subr.bf16.mxu1 %v514_v1  ;;  %468 = vmatprep.subr.bf16.mxu0 %v514_v1 }
  0x27   :  { %449 = vmatpush3.bf16.msra.mxu1 %v448_v18  ;;  %470 = vmatpush3.bf16.msra.mxu0 %v469_v39 }
  0x28   :  { %450 = vmatprep.subr.bf16.mxu1 %v514_v1  ;;  %471 = vmatprep.subr.bf16.mxu0 %v514_v1 }
  0x2b   :  { %452 = vmatpush3.bf16.msra.mxu1 %v451_v21  ;;  %473 = vmatpush3.bf16.msra.mxu0 %v472_v42 }
  0x2c   :  { %453 = vmatprep.subr.bf16.mxu1 %v514_v1  ;;  %474 = vmatprep.subr.bf16.mxu0 %v514_v1 }
  0x2f   :  { %455 = vmatpush3.bf16.msra.mxu1 %v454_v24  ;;  %476 = vmatpush3.bf16.msra.mxu0 %v475_v45 }
  0x30   :  { %456 = vmatprep.subr.bf16.mxu1 %v514_v1  ;;  %477 = vmatprep.subr.bf16.mxu0 %v514_v1 }
  0x33   :  { %458 = vmatpush3.bf16.msra.mxu1 %v457_v27  ;;  %479 = vmatpush3.bf16.msra.mxu0 %v478_v48 }
  0x34   :  { %480 = vmatprep.subr.bf16.mxu0 %v514_v1 }
  0x37   :  { %482 = vmatpush3.bf16.msra.mxu0 %v481_v57 }
  0xe8   :  { %v117_v50 = vpop.f32.mrb[0].mxu0 }
  0xe9   :  { %v118_v51 = vadd.f32 %v320_v49, %v117_v50  ;;  %v364_v52 = vpop.f32.mrb[1].mxu0 }
  0xeb   :  { %v122_v53 = vmul.f32 0.1, %v118_v51  ;;  %vm121_vm2 = vcmp.gt.f32.partialorder %v118_v51, 0.0 }
  0xed   :  { %v123_v54 = vsel %vm121_vm2, %v118_v51, %v122_v53 }
  0xee   :  { %398 = vmatmul.mubr.f32.vlgmr.msra.gmra.mrb[0].mxu1 %v123_v54 }
 0x1c1   :  { %v213_v59 = vpop.f32.mrb[0].mxu1 }
 0x1c2   :  { %v214_v60 = vadd.f32 %v322_v58, %v213_v59  ;;  %v399_v61 = vpop.f32.mrb[1].mxu1 }
 0x1c4   :  { %vm217_vm3 = vcmp.gt.f32.partialorder %v214_v60, 0.0  ;;  %v218_v62 = vmul.f32 0.1, %v214_v60 }
 0x1c6   :  { %v219_v63 = vsel %vm217_vm3, %v214_v60, %v218_v62 }
 0x1c7   :  { %433 = vmatmul.mubr.f32.vlgmr.msra.gmra.mrb[2].mxu0 %v219_v63 }
 0x29a   :  { %v309_v1 = vpop.f32.mrb[2].mxu0 }
 0x29b   :  { %v310_v2 = vadd.f32 %v323_v0, %v309_v1  ;;  %v434_v3 = vpop.f32.mrb[3].mxu0 }
 0x29d   :  { %314 = vst.msk [vmem:[%s704_s7] sm:$0xff] %vm313_vm4, %v310_v2 }
 0x29e   :  { %319 = vsyncpa [#allocation3], 1 }

</bundles_post_ra>
